<compile_context>
chip_gen: v5e
topology: v5e:2x2
jax: 0.10.0
libtpu: 0.0.40
codegen_flags: <defaults>
</compile_context>

<pallas_src>
import functools

import jax
import jax.numpy as jnp
from jax.experimental import pallas as pl
from jax.experimental.pallas import tpu as pltpu

ENC_DIM = 4  # Encoder(out_channel=4) / Decoder(in_channal=4) defaults


# ----------------------------------------------------------------------------
# Fused whole-forward Pallas kernel
# ----------------------------------------------------------------------------
def fused_gcn_forward_kernel(layer_dims, n_class, *refs):
    """All layers in one kernel; h, z, msgs, dec, agg never leave VMEM."""
    num_layers = len(layer_dims)
    (x_ref, src_ref, dst_ref, norm_w_ref, inv_deg_ref,
     node_oh_ref, dst_oh_ref) = refs[:7]
    layer_refs = refs[7:7 + 4 * num_layers]
    o_ref = refs[7 + 4 * num_layers]

    n = x_ref.shape[0]
    e = src_ref.shape[0]

    x = x_ref[...]
    node_oh = node_oh_ref[...]   # (N, C) label one-hot; label==-1 -> zero row
    dst_oh = dst_oh_ref[...]     # (E, C) destination-label one-hot

    # Build gather / scatter-mean operators in-kernel (VPU compares), once per forward.
    # TODO(synk): for large graphs replace these dense (E,N)/(N,E) operators with an
    # edge-tiled index-based gather + segment-sum using scalar-prefetched src/dst.
    src_ids = src_ref[...]       # (E, 1) i32
    dst_ids = dst_ref[...]       # (1, E) i32
    gather_w = jnp.where(
        jax.lax.broadcasted_iota(jnp.int32, (e, n), 1) == src_ids,
        norm_w_ref[...], 0.0)    # (E, N): row e = gcn_norm[e] * onehot(src[e])
    scatter_m = jnp.where(
        jax.lax.broadcasted_iota(jnp.int32, (n, e), 0) == dst_ids,
        inv_deg_ref[...], 0.0)   # (N, E): row v = (1/deg[v]) * [dst == v]

    for l, (_, dout) in enumerate(layer_dims):  # static unroll; per-layer shapes differ
        w_lin_ref, w_enc_ref, w_dec_ref, vec_ref = layer_refs[4 * l:4 * (l + 1)]

        vec = vec_ref[...]                      # (1, 2*Dout + C*ENC + C*Dout) packed
        h_bias = vec[:, 0:dout]                 # folded BN shift of previous layer
        conv_bias = vec[:, dout:2 * dout]       # GCNConv bias
        off = 2 * dout
        b_enc = vec[:, off:off + n_class * ENC_DIM]
        off += n_class * ENC_DIM
        b_dec = vec[:, off:off + n_class * dout]

        # GCNConv.lin (BN of previous layer folded into W_lin / h_bias)
        h = jnp.dot(x, w_lin_ref[...], preferred_element_type=jnp.float32) + h_bias

        # encoder_forward: stacked Linear(Dout -> C*ENC) + relu, then per-node routing
        y_enc = jnp.maximum(
            jnp.dot(h, w_enc_ref[...], preferred_element_type=jnp.float32) + b_enc, 0.0)
        z = None
        for c in range(n_class):
            part = y_enc[:, c * ENC_DIM:(c + 1) * ENC_DIM] * node_oh[:, c:c + 1]
            z = part if z is None else z + part                                # (N, ENC)

        # message: gather z[src] * gcn_norm  (single small MXU pass)
        msgs = jnp.dot(gather_w, z, preferred_element_type=jnp.float32)        # (E, ENC)

        # aggregate: stacked decoder + per-destination routing, then scatter_mean
        y_dec = jnp.maximum(
            jnp.dot(msgs, w_dec_ref[...], preferred_element_type=jnp.float32) + b_dec, 0.0)
        dec = None
        for c in range(n_class):
            part = y_dec[:, c * dout:(c + 1) * dout] * dst_oh[:, c:c + 1]
            dec = part if dec is None else dec + part                          # (E, Dout)
        agg = jnp.dot(scatter_m, dec, preferred_element_type=jnp.float32)      # (N, Dout)

        # update_node + GCNConv bias (BN affine is folded into the NEXT layer's lin)
        x = jnp.maximum(h + agg + conv_bias, 0.0)

    o_ref[...] = x.astype(o_ref.dtype)


def _vmem_spec():
    return pl.BlockSpec(memory_space=pltpu.MemorySpace.VMEM)


# ----------------------------------------------------------------------------
# Parameter init (matches the reference module structure)
# ----------------------------------------------------------------------------
def init_layer_params(key, in_dim, out_dim, n_class):
    k = jax.random.split(key, 5)
    s_lin = 0.2 / jnp.sqrt(in_dim)
    s_enc = 0.2 / jnp.sqrt(out_dim)
    s_dec = 0.2 / jnp.sqrt(ENC_DIM)
    return {
        "w_lin": jax.random.normal(k[0], (in_dim, out_dim), jnp.float32) * s_lin,
        "bias": jnp.zeros((1, out_dim), jnp.float32),  # GCNConv bias (zeros init)
        "w_enc": jax.random.normal(k[1], (n_class, out_dim, ENC_DIM), jnp.float32) * s_enc,
        "b_enc": jax.random.normal(k[2], (n_class, 1, ENC_DIM), jnp.float32) * 0.01,
        "w_dec": jax.random.normal(k[3], (n_class, ENC_DIM, out_dim), jnp.float32) * s_dec,
        "b_dec": jax.random.normal(k[4], (n_class, 1, out_dim), jnp.float32) * 0.01,
    }


def init_bn_params(dim, eps=1e-5):
    gamma = jnp.ones((dim,), jnp.float32)
    beta = jnp.zeros((dim,), jnp.float32)
    running_mean = jnp.zeros((dim,), jnp.float32)
    running_var = jnp.ones((dim,), jnp.float32)
    scale = gamma / jnp.sqrt(running_var + eps)
    shift = beta - running_mean * scale
    return scale, shift


# ----------------------------------------------------------------------------
# One-time precompute (graph + labels are constant across forwards) — hoisted
# out of the jitted forward per the perf review.
# ----------------------------------------------------------------------------
def precompute_graph(src, dst, labels, num_nodes, n_class):
    e = src.shape[0]
    # gcn_norm with add_self_loops=False: symmetric 1/sqrt(deg_src*deg_dst), deg over dst.
    deg = jax.ops.segment_sum(jnp.ones((e,), jnp.float32), dst, num_segments=num_nodes)
    deg_inv_sqrt = jnp.where(deg > 0, 1.0 / jnp.sqrt(deg), 0.0)
    norm_w = (deg_inv_sqrt[src] * deg_inv_sqrt[dst]).reshape(e, 1)
    inv_deg = jnp.where(deg > 0, 1.0 / deg, 0.0).reshape(num_nodes, 1)  # scatter_mean denom
    node_onehot = jax.nn.one_hot(labels, n_class, dtype=jnp.float32)    # (N, C); -1 -> zeros
    # TODO(synk): reference decoder_forward is undefined for messages whose destination has
    # label -1; here they decode to zeros but still count in the scatter_mean denominator.
    dst_onehot = node_onehot[dst]                                       # (E, C)
    return {
        "src_col": src.astype(jnp.int32).reshape(e, 1),
        "dst_row": dst.astype(jnp.int32).reshape(1, e),
        "norm_w": norm_w,
        "inv_deg": inv_deg,
        "node_onehot": node_onehot,
        "dst_onehot": dst_onehot,
    }


def pack_layer_params(layer_params, bn_affines, n_class):
    """Stack per-class MLPs, fold eval-BN into the next layer's lin, pack tiny vectors."""
    packed = []
    for l, params in enumerate(layer_params):
        w_lin = params["w_lin"]
        d_out = w_lin.shape[1]
        if l == 0:
            w_lin_f = w_lin
            h_bias = jnp.zeros((1, d_out), jnp.float32)
        else:  # BN after layer l-1's relu: fold scale into W_lin rows, shift into a bias
            scale, shift = bn_affines[l - 1]
            w_lin_f = scale.reshape(-1, 1) * w_lin
            h_bias = shift.reshape(1, -1) @ w_lin
        w_enc_st = jnp.transpose(params["w_enc"], (1, 0, 2)).reshape(d_out, n_class * ENC_DIM)
        b_enc_st = params["b_enc"].reshape(1, n_class * ENC_DIM)
        w_dec_st = jnp.transpose(params["w_dec"], (1, 0, 2)).reshape(ENC_DIM, n_class * d_out)
        b_dec_st = params["b_dec"].reshape(1, n_class * d_out)
        vec_pack = jnp.concatenate([h_bias, params["bias"], b_enc_st, b_dec_st], axis=1)
        packed.append({"w_lin": w_lin_f, "w_enc": w_enc_st, "w_dec": w_dec_st, "vec": vec_pack})
    return packed


# ----------------------------------------------------------------------------
# Forward: one pallas_call for the entire multi-layer model
# ----------------------------------------------------------------------------
@jax.jit
def our_model_forward(x, graph, packed_layers):
    n = x.shape[0]
    n_class = graph["node_onehot"].shape[1]
    layer_dims = tuple((p["w_lin"].shape[0], p["w_lin"].shape[1]) for p in packed_layers)
    out_dim = layer_dims[-1][1]

    inputs = [x, graph["src_col"], graph["dst_row"], graph["norm_w"], graph["inv_deg"],
              graph["node_onehot"], graph["dst_onehot"]]
    for p in packed_layers:
        inputs += [p["w_lin"], p["w_enc"], p["w_dec"], p["vec"]]

    kernel = functools.partial(fused_gcn_forward_kernel, layer_dims, n_class)
    return pl.pallas_call(
        kernel,
        out_shape=jax.ShapeDtypeStruct((n, out_dim), jnp.float32),
        in_specs=[_vmem_spec()] * len(inputs),
        out_specs=_vmem_spec(),
        compiler_params=pltpu.CompilerParams(vmem_limit_bytes=32 * 1024 * 1024),
    )(*inputs)


# ----------------------------------------------------------------------------
# Main
# ----------------------------------------------------------------------------
if __name__ == "__main__":
    input_dim, hidden_dim, output_dim, num_layers = 8, 16, 4, 3
    n_class = output_dim
    num_nodes, num_edges = 12, 24

    key = jax.random.PRNGKey(0)
    kx, ke1, ke2, klbl, kp = jax.random.split(key, 5)

    x = jax.random.normal(kx, (num_nodes, input_dim), jnp.float32)
    src = jax.random.randint(ke1, (num_edges,), 0, num_nodes, jnp.int32)
    dst = jax.random.randint(ke2, (num_edges,), 0, num_nodes, jnp.int32)
    # training labels in {-1, 0, .., n_class-1}; at least one unlabeled (-1) node
    labels = jax.random.randint(klbl, (num_nodes,), -1, n_class, jnp.int32)
    labels = labels.at[0].set(-1)

    # layer dims: [input->hidden] + (num_layers-2)*[hidden->hidden] + [hidden->output]
    dims = ([(input_dim, hidden_dim)]
            + [(hidden_dim, hidden_dim)] * (num_layers - 2)
            + [(hidden_dim, output_dim)])
    layer_keys = jax.random.split(kp, num_layers)
    layer_params = [init_layer_params(k, di, do, n_class) for k, (di, do) in zip(layer_keys, dims)]
    bn_affines = [init_bn_params(hidden_dim) for _ in range(num_layers - 1)]

    # one-time precompute (cached across calls; graph/labels/params do not change in eval)
    graph = precompute_graph(src, dst, labels, num_nodes, n_class)
    packed = pack_layer_params(layer_params, bn_affines, n_class)

    out = our_model_forward(x, graph, packed)
    out = jax.block_until_ready(out)
    assert out.shape == (num_nodes, output_dim)
    assert bool(jnp.all(jnp.isfinite(out)))
    print("KERNEL_OK")
</pallas_src>

<mosaic_0001>
module attributes {stable_mosaic.version = 11 : i64} {
  func.func @fused_gcn_forward_kernel(%arg0: memref<12x8xf32, #tpu.memory_space<vmem>>, %arg1: memref<24x1xi32, #tpu.memory_space<vmem>>, %arg2: memref<1x24xi32, #tpu.memory_space<vmem>>, %arg3: memref<24x1xf32, #tpu.memory_space<vmem>>, %arg4: memref<12x1xf32, #tpu.memory_space<vmem>>, %arg5: memref<12x4xf32, #tpu.memory_space<vmem>>, %arg6: memref<24x4xf32, #tpu.memory_space<vmem>>, %arg7: memref<8x16xf32, #tpu.memory_space<vmem>>, %arg8: memref<16x16xf32, #tpu.memory_space<vmem>>, %arg9: memref<4x64xf32, #tpu.memory_space<vmem>>, %arg10: memref<1x112xf32, #tpu.memory_space<vmem>>, %arg11: memref<16x16xf32, #tpu.memory_space<vmem>>, %arg12: memref<16x16xf32, #tpu.memory_space<vmem>>, %arg13: memref<4x64xf32, #tpu.memory_space<vmem>>, %arg14: memref<1x112xf32, #tpu.memory_space<vmem>>, %arg15: memref<16x4xf32, #tpu.memory_space<vmem>>, %arg16: memref<4x16xf32, #tpu.memory_space<vmem>>, %arg17: memref<4x16xf32, #tpu.memory_space<vmem>>, %arg18: memref<1x40xf32, #tpu.memory_space<vmem>>, %arg19: memref<12x4xf32, #tpu.memory_space<vmem>>) attributes {dimension_semantics = [], scalar_prefetch = 0 : i64, scratch_operands = 0 : i64, tpu.core_type = #tpu.core_type<tc>} {
    %c0 = arith.constant 0 : index
    %c0_0 = arith.constant 0 : index
    %0 = vector.load %arg0[%c0, %c0_0] : memref<12x8xf32, #tpu.memory_space<vmem>>, vector<12x8xf32>
    %c0_1 = arith.constant 0 : index
    %c0_2 = arith.constant 0 : index
    %1 = vector.load %arg5[%c0_1, %c0_2] : memref<12x4xf32, #tpu.memory_space<vmem>>, vector<12x4xf32>
    %c0_3 = arith.constant 0 : index
    %c0_4 = arith.constant 0 : index
    %2 = vector.load %arg6[%c0_3, %c0_4] : memref<24x4xf32, #tpu.memory_space<vmem>>, vector<24x4xf32>
    %c0_5 = arith.constant 0 : index
    %c0_6 = arith.constant 0 : index
    %3 = vector.load %arg1[%c0_5, %c0_6] : memref<24x1xi32, #tpu.memory_space<vmem>>, vector<24x1xi32>
    %c0_7 = arith.constant 0 : index
    %c0_8 = arith.constant 0 : index
    %4 = vector.load %arg2[%c0_7, %c0_8] : memref<1x24xi32, #tpu.memory_space<vmem>>, vector<1x24xi32>
    %5 = tpu.iota {dimensions = array<i32: 1>} : vector<24x12xi32>
    %6 = vector.broadcast %3 : vector<24x1xi32> to vector<24x12xi32>
    %7 = arith.cmpi eq, %5, %6 : vector<24x12xi32>
    %c0_9 = arith.constant 0 : index
    %c0_10 = arith.constant 0 : index
    %8 = vector.load %arg3[%c0_9, %c0_10] : memref<24x1xf32, #tpu.memory_space<vmem>>, vector<24x1xf32>
    %cst = arith.constant 0.000000e+00 : f32
    %9 = vector.shape_cast %8 : vector<24x1xf32> to vector<24x1xf32>
    %10 = vector.broadcast %9 : vector<24x1xf32> to vector<24x12xf32>
    %11 = vector.broadcast %cst : f32 to vector<24x12xf32>
    %12 = arith.select %7, %10, %11 : vector<24x12xi1>, vector<24x12xf32>
    %13 = tpu.iota {dimensions = array<i32: 0>} : vector<12x24xi32>
    %14 = vector.broadcast %4 : vector<1x24xi32> to vector<12x24xi32>
    %15 = arith.cmpi eq, %13, %14 : vector<12x24xi32>
    %c0_11 = arith.constant 0 : index
    %c0_12 = arith.constant 0 : index
    %16 = vector.load %arg4[%c0_11, %c0_12] : memref<12x1xf32, #tpu.memory_space<vmem>>, vector<12x1xf32>
    %cst_13 = arith.constant 0.000000e+00 : f32
    %17 = vector.shape_cast %16 : vector<12x1xf32> to vector<12x1xf32>
    %18 = vector.broadcast %17 : vector<12x1xf32> to vector<12x24xf32>
    %19 = vector.broadcast %cst_13 : f32 to vector<12x24xf32>
    %20 = arith.select %15, %18, %19 : vector<12x24xi1>, vector<12x24xf32>
    %c0_14 = arith.constant 0 : index
    %c0_15 = arith.constant 0 : index
    %21 = vector.load %arg10[%c0_14, %c0_15] : memref<1x112xf32, #tpu.memory_space<vmem>>, vector<1x112xf32>
    %22 = vector.extract_strided_slice %21 {offsets = [0, 0], sizes = [1, 16], strides = [1, 1]} : vector<1x112xf32> to vector<1x16xf32>
    %23 = vector.extract_strided_slice %21 {offsets = [0, 16], sizes = [1, 16], strides = [1, 1]} : vector<1x112xf32> to vector<1x16xf32>
    %24 = vector.extract_strided_slice %21 {offsets = [0, 32], sizes = [1, 16], strides = [1, 1]} : vector<1x112xf32> to vector<1x16xf32>
    %25 = vector.extract_strided_slice %21 {offsets = [0, 48], sizes = [1, 64], strides = [1, 1]} : vector<1x112xf32> to vector<1x64xf32>
    %c0_16 = arith.constant 0 : index
    %c0_17 = arith.constant 0 : index
    %26 = vector.load %arg7[%c0_16, %c0_17] : memref<8x16xf32, #tpu.memory_space<vmem>>, vector<8x16xf32>
    %cst_18 = arith.constant dense<0.000000e+00> : vector<12x16xf32>
    %27 = tpu.matmul %0, %26, %cst_18 {dimension_numbers = #tpu.dot_dimension_numbers<[1], [0], [0], [1], [0, 0, 1, 1], [], []>} : vector<12x8xf32>, vector<8x16xf32>, vector<12x16xf32> -> vector<12x16xf32>
    %28 = vector.broadcast %22 : vector<1x16xf32> to vector<12x16xf32>
    %29 = arith.addf %27, %28 : vector<12x16xf32>
    %c0_19 = arith.constant 0 : index
    %c0_20 = arith.constant 0 : index
    %30 = vector.load %arg8[%c0_19, %c0_20] : memref<16x16xf32, #tpu.memory_space<vmem>>, vector<16x16xf32>
    %cst_21 = arith.constant dense<0.000000e+00> : vector<12x16xf32>
    %31 = tpu.matmul %29, %30, %cst_21 {dimension_numbers = #tpu.dot_dimension_numbers<[1], [0], [0], [1], [0, 0, 1, 1], [], []>} : vector<12x16xf32>, vector<16x16xf32>, vector<12x16xf32> -> vector<12x16xf32>
    %32 = vector.broadcast %24 : vector<1x16xf32> to vector<12x16xf32>
    %33 = arith.addf %31, %32 : vector<12x16xf32>
    %cst_22 = arith.constant 0.000000e+00 : f32
    %34 = vector.broadcast %cst_22 : f32 to vector<12x16xf32>
    %35 = arith.maximumf %33, %34 : vector<12x16xf32>
    %36 = vector.extract_strided_slice %35 {offsets = [0, 0], sizes = [12, 4], strides = [1, 1]} : vector<12x16xf32> to vector<12x4xf32>
    %37 = vector.extract_strided_slice %1 {offsets = [0, 0], sizes = [12, 1], strides = [1, 1]} : vector<12x4xf32> to vector<12x1xf32>
    %38 = vector.broadcast %37 : vector<12x1xf32> to vector<12x4xf32>
    %39 = arith.mulf %36, %38 : vector<12x4xf32>
    %40 = vector.extract_strided_slice %35 {offsets = [0, 4], sizes = [12, 4], strides = [1, 1]} : vector<12x16xf32> to vector<12x4xf32>
    %41 = vector.extract_strided_slice %1 {offsets = [0, 1], sizes = [12, 1], strides = [1, 1]} : vector<12x4xf32> to vector<12x1xf32>
    %42 = vector.broadcast %41 : vector<12x1xf32> to vector<12x4xf32>
    %43 = arith.mulf %40, %42 : vector<12x4xf32>
    %44 = arith.addf %39, %43 : vector<12x4xf32>
    %45 = vector.extract_strided_slice %35 {offsets = [0, 8], sizes = [12, 4], strides = [1, 1]} : vector<12x16xf32> to vector<12x4xf32>
    %46 = vector.extract_strided_slice %1 {offsets = [0, 2], sizes = [12, 1], strides = [1, 1]} : vector<12x4xf32> to vector<12x1xf32>
    %47 = vector.broadcast %46 : vector<12x1xf32> to vector<12x4xf32>
    %48 = arith.mulf %45, %47 : vector<12x4xf32>
    %49 = arith.addf %44, %48 : vector<12x4xf32>
    %50 = vector.extract_strided_slice %35 {offsets = [0, 12], sizes = [12, 4], strides = [1, 1]} : vector<12x16xf32> to vector<12x4xf32>
    %51 = vector.extract_strided_slice %1 {offsets = [0, 3], sizes = [12, 1], strides = [1, 1]} : vector<12x4xf32> to vector<12x1xf32>
    %52 = vector.broadcast %51 : vector<12x1xf32> to vector<12x4xf32>
    %53 = arith.mulf %50, %52 : vector<12x4xf32>
    %54 = arith.addf %49, %53 : vector<12x4xf32>
    %cst_23 = arith.constant dense<0.000000e+00> : vector<24x4xf32>
    %55 = tpu.matmul %12, %54, %cst_23 {dimension_numbers = #tpu.dot_dimension_numbers<[1], [0], [0], [1], [0, 0, 1, 1], [], []>} : vector<24x12xf32>, vector<12x4xf32>, vector<24x4xf32> -> vector<24x4xf32>
    %c0_24 = arith.constant 0 : index
    %c0_25 = arith.constant 0 : index
    %56 = vector.load %arg9[%c0_24, %c0_25] : memref<4x64xf32, #tpu.memory_space<vmem>>, vector<4x64xf32>
    %cst_26 = arith.constant dense<0.000000e+00> : vector<24x64xf32>
    %57 = tpu.matmul %55, %56, %cst_26 {dimension_numbers = #tpu.dot_dimension_numbers<[1], [0], [0], [1], [0, 0, 1, 1], [], []>} : vector<24x4xf32>, vector<4x64xf32>, vector<24x64xf32> -> vector<24x64xf32>
    %58 = vector.broadcast %25 : vector<1x64xf32> to vector<24x64xf32>
    %59 = arith.addf %57, %58 : vector<24x64xf32>
    %cst_27 = arith.constant 0.000000e+00 : f32
    %60 = vector.broadcast %cst_27 : f32 to vector<24x64xf32>
    %61 = arith.maximumf %59, %60 : vector<24x64xf32>
    %62 = vector.extract_strided_slice %61 {offsets = [0, 0], sizes = [24, 16], strides = [1, 1]} : vector<24x64xf32> to vector<24x16xf32>
    %63 = vector.extract_strided_slice %2 {offsets = [0, 0], sizes = [24, 1], strides = [1, 1]} : vector<24x4xf32> to vector<24x1xf32>
    %64 = vector.broadcast %63 : vector<24x1xf32> to vector<24x16xf32>
    %65 = arith.mulf %62, %64 : vector<24x16xf32>
    %66 = vector.extract_strided_slice %61 {offsets = [0, 16], sizes = [24, 16], strides = [1, 1]} : vector<24x64xf32> to vector<24x16xf32>
    %67 = vector.extract_strided_slice %2 {offsets = [0, 1], sizes = [24, 1], strides = [1, 1]} : vector<24x4xf32> to vector<24x1xf32>
    %68 = vector.broadcast %67 : vector<24x1xf32> to vector<24x16xf32>
    %69 = arith.mulf %66, %68 : vector<24x16xf32>
    %70 = arith.addf %65, %69 : vector<24x16xf32>
    %71 = vector.extract_strided_slice %61 {offsets = [0, 32], sizes = [24, 16], strides = [1, 1]} : vector<24x64xf32> to vector<24x16xf32>
    %72 = vector.extract_strided_slice %2 {offsets = [0, 2], sizes = [24, 1], strides = [1, 1]} : vector<24x4xf32> to vector<24x1xf32>
    %73 = vector.broadcast %72 : vector<24x1xf32> to vector<24x16xf32>
    %74 = arith.mulf %71, %73 : vector<24x16xf32>
    %75 = arith.addf %70, %74 : vector<24x16xf32>
    %76 = vector.extract_strided_slice %61 {offsets = [0, 48], sizes = [24, 16], strides = [1, 1]} : vector<24x64xf32> to vector<24x16xf32>
    %77 = vector.extract_strided_slice %2 {offsets = [0, 3], sizes = [24, 1], strides = [1, 1]} : vector<24x4xf32> to vector<24x1xf32>
    %78 = vector.broadcast %77 : vector<24x1xf32> to vector<24x16xf32>
    %79 = arith.mulf %76, %78 : vector<24x16xf32>
    %80 = arith.addf %75, %79 : vector<24x16xf32>
    %cst_28 = arith.constant dense<0.000000e+00> : vector<12x16xf32>
    %81 = tpu.matmul %20, %80, %cst_28 {dimension_numbers = #tpu.dot_dimension_numbers<[1], [0], [0], [1], [0, 0, 1, 1], [], []>} : vector<12x24xf32>, vector<24x16xf32>, vector<12x16xf32> -> vector<12x16xf32>
    %82 = arith.addf %29, %81 : vector<12x16xf32>
    %83 = vector.broadcast %23 : vector<1x16xf32> to vector<12x16xf32>
    %84 = arith.addf %82, %83 : vector<12x16xf32>
    %cst_29 = arith.constant 0.000000e+00 : f32
    %85 = vector.broadcast %cst_29 : f32 to vector<12x16xf32>
    %86 = arith.maximumf %84, %85 : vector<12x16xf32>
    %c0_30 = arith.constant 0 : index
    %c0_31 = arith.constant 0 : index
    %87 = vector.load %arg14[%c0_30, %c0_31] : memref<1x112xf32, #tpu.memory_space<vmem>>, vector<1x112xf32>
    %88 = vector.extract_strided_slice %87 {offsets = [0, 0], sizes = [1, 16], strides = [1, 1]} : vector<1x112xf32> to vector<1x16xf32>
    %89 = vector.extract_strided_slice %87 {offsets = [0, 16], sizes = [1, 16], strides = [1, 1]} : vector<1x112xf32> to vector<1x16xf32>
    %90 = vector.extract_strided_slice %87 {offsets = [0, 32], sizes = [1, 16], strides = [1, 1]} : vector<1x112xf32> to vector<1x16xf32>
    %91 = vector.extract_strided_slice %87 {offsets = [0, 48], sizes = [1, 64], strides = [1, 1]} : vector<1x112xf32> to vector<1x64xf32>
    %c0_32 = arith.constant 0 : index
    %c0_33 = arith.constant 0 : index
    %92 = vector.load %arg11[%c0_32, %c0_33] : memref<16x16xf32, #tpu.memory_space<vmem>>, vector<16x16xf32>
    %cst_34 = arith.constant dense<0.000000e+00> : vector<12x16xf32>
    %93 = tpu.matmul %86, %92, %cst_34 {dimension_numbers = #tpu.dot_dimension_numbers<[1], [0], [0], [1], [0, 0, 1, 1], [], []>} : vector<12x16xf32>, vector<16x16xf32>, vector<12x16xf32> -> vector<12x16xf32>
    %94 = vector.broadcast %88 : vector<1x16xf32> to vector<12x16xf32>
    %95 = arith.addf %93, %94 : vector<12x16xf32>
    %c0_35 = arith.constant 0 : index
    %c0_36 = arith.constant 0 : index
    %96 = vector.load %arg12[%c0_35, %c0_36] : memref<16x16xf32, #tpu.memory_space<vmem>>, vector<16x16xf32>
    %cst_37 = arith.constant dense<0.000000e+00> : vector<12x16xf32>
    %97 = tpu.matmul %95, %96, %cst_37 {dimension_numbers = #tpu.dot_dimension_numbers<[1], [0], [0], [1], [0, 0, 1, 1], [], []>} : vector<12x16xf32>, vector<16x16xf32>, vector<12x16xf32> -> vector<12x16xf32>
    %98 = vector.broadcast %90 : vector<1x16xf32> to vector<12x16xf32>
    %99 = arith.addf %97, %98 : vector<12x16xf32>
    %cst_38 = arith.constant 0.000000e+00 : f32
    %100 = vector.broadcast %cst_38 : f32 to vector<12x16xf32>
    %101 = arith.maximumf %99, %100 : vector<12x16xf32>
    %102 = vector.extract_strided_slice %101 {offsets = [0, 0], sizes = [12, 4], strides = [1, 1]} : vector<12x16xf32> to vector<12x4xf32>
    %103 = vector.extract_strided_slice %1 {offsets = [0, 0], sizes = [12, 1], strides = [1, 1]} : vector<12x4xf32> to vector<12x1xf32>
    %104 = vector.broadcast %103 : vector<12x1xf32> to vector<12x4xf32>
    %105 = arith.mulf %102, %104 : vector<12x4xf32>
    %106 = vector.extract_strided_slice %101 {offsets = [0, 4], sizes = [12, 4], strides = [1, 1]} : vector<12x16xf32> to vector<12x4xf32>
    %107 = vector.extract_strided_slice %1 {offsets = [0, 1], sizes = [12, 1], strides = [1, 1]} : vector<12x4xf32> to vector<12x1xf32>
    %108 = vector.broadcast %107 : vector<12x1xf32> to vector<12x4xf32>
    %109 = arith.mulf %106, %108 : vector<12x4xf32>
    %110 = arith.addf %105, %109 : vector<12x4xf32>
    %111 = vector.extract_strided_slice %101 {offsets = [0, 8], sizes = [12, 4], strides = [1, 1]} : vector<12x16xf32> to vector<12x4xf32>
    %112 = vector.extract_strided_slice %1 {offsets = [0, 2], sizes = [12, 1], strides = [1, 1]} : vector<12x4xf32> to vector<12x1xf32>
    %113 = vector.broadcast %112 : vector<12x1xf32> to vector<12x4xf32>
    %114 = arith.mulf %111, %113 : vector<12x4xf32>
    %115 = arith.addf %110, %114 : vector<12x4xf32>
    %116 = vector.extract_strided_slice %101 {offsets = [0, 12], sizes = [12, 4], strides = [1, 1]} : vector<12x16xf32> to vector<12x4xf32>
    %117 = vector.extract_strided_slice %1 {offsets = [0, 3], sizes = [12, 1], strides = [1, 1]} : vector<12x4xf32> to vector<12x1xf32>
    %118 = vector.broadcast %117 : vector<12x1xf32> to vector<12x4xf32>
    %119 = arith.mulf %116, %118 : vector<12x4xf32>
    %120 = arith.addf %115, %119 : vector<12x4xf32>
    %cst_39 = arith.constant dense<0.000000e+00> : vector<24x4xf32>
    %121 = tpu.matmul %12, %120, %cst_39 {dimension_numbers = #tpu.dot_dimension_numbers<[1], [0], [0], [1], [0, 0, 1, 1], [], []>} : vector<24x12xf32>, vector<12x4xf32>, vector<24x4xf32> -> vector<24x4xf32>
    %c0_40 = arith.constant 0 : index
    %c0_41 = arith.constant 0 : index
    %122 = vector.load %arg13[%c0_40, %c0_41] : memref<4x64xf32, #tpu.memory_space<vmem>>, vector<4x64xf32>
    %cst_42 = arith.constant dense<0.000000e+00> : vector<24x64xf32>
    %123 = tpu.matmul %121, %122, %cst_42 {dimension_numbers = #tpu.dot_dimension_numbers<[1], [0], [0], [1], [0, 0, 1, 1], [], []>} : vector<24x4xf32>, vector<4x64xf32>, vector<24x64xf32> -> vector<24x64xf32>
    %124 = vector.broadcast %91 : vector<1x64xf32> to vector<24x64xf32>
    %125 = arith.addf %123, %124 : vector<24x64xf32>
    %cst_43 = arith.constant 0.000000e+00 : f32
    %126 = vector.broadcast %cst_43 : f32 to vector<24x64xf32>
    %127 = arith.maximumf %125, %126 : vector<24x64xf32>
    %128 = vector.extract_strided_slice %127 {offsets = [0, 0], sizes = [24, 16], strides = [1, 1]} : vector<24x64xf32> to vector<24x16xf32>
    %129 = vector.extract_strided_slice %2 {offsets = [0, 0], sizes = [24, 1], strides = [1, 1]} : vector<24x4xf32> to vector<24x1xf32>
    %130 = vector.broadcast %129 : vector<24x1xf32> to vector<24x16xf32>
    %131 = arith.mulf %128, %130 : vector<24x16xf32>
    %132 = vector.extract_strided_slice %127 {offsets = [0, 16], sizes = [24, 16], strides = [1, 1]} : vector<24x64xf32> to vector<24x16xf32>
    %133 = vector.extract_strided_slice %2 {offsets = [0, 1], sizes = [24, 1], strides = [1, 1]} : vector<24x4xf32> to vector<24x1xf32>
    %134 = vector.broadcast %133 : vector<24x1xf32> to vector<24x16xf32>
    %135 = arith.mulf %132, %134 : vector<24x16xf32>
    %136 = arith.addf %131, %135 : vector<24x16xf32>
    %137 = vector.extract_strided_slice %127 {offsets = [0, 32], sizes = [24, 16], strides = [1, 1]} : vector<24x64xf32> to vector<24x16xf32>
    %138 = vector.extract_strided_slice %2 {offsets = [0, 2], sizes = [24, 1], strides = [1, 1]} : vector<24x4xf32> to vector<24x1xf32>
    %139 = vector.broadcast %138 : vector<24x1xf32> to vector<24x16xf32>
    %140 = arith.mulf %137, %139 : vector<24x16xf32>
    %141 = arith.addf %136, %140 : vector<24x16xf32>
    %142 = vector.extract_strided_slice %127 {offsets = [0, 48], sizes = [24, 16], strides = [1, 1]} : vector<24x64xf32> to vector<24x16xf32>
    %143 = vector.extract_strided_slice %2 {offsets = [0, 3], sizes = [24, 1], strides = [1, 1]} : vector<24x4xf32> to vector<24x1xf32>
    %144 = vector.broadcast %143 : vector<24x1xf32> to vector<24x16xf32>
    %145 = arith.mulf %142, %144 : vector<24x16xf32>
    %146 = arith.addf %141, %145 : vector<24x16xf32>
    %cst_44 = arith.constant dense<0.000000e+00> : vector<12x16xf32>
    %147 = tpu.matmul %20, %146, %cst_44 {dimension_numbers = #tpu.dot_dimension_numbers<[1], [0], [0], [1], [0, 0, 1, 1], [], []>} : vector<12x24xf32>, vector<24x16xf32>, vector<12x16xf32> -> vector<12x16xf32>
    %148 = arith.addf %95, %147 : vector<12x16xf32>
    %149 = vector.broadcast %89 : vector<1x16xf32> to vector<12x16xf32>
    %150 = arith.addf %148, %149 : vector<12x16xf32>
    %cst_45 = arith.constant 0.000000e+00 : f32
    %151 = vector.broadcast %cst_45 : f32 to vector<12x16xf32>
    %152 = arith.maximumf %150, %151 : vector<12x16xf32>
    %c0_46 = arith.constant 0 : index
    %c0_47 = arith.constant 0 : index
    %153 = vector.load %arg18[%c0_46, %c0_47] : memref<1x40xf32, #tpu.memory_space<vmem>>, vector<1x40xf32>
    %154 = vector.extract_strided_slice %153 {offsets = [0, 0], sizes = [1, 4], strides = [1, 1]} : vector<1x40xf32> to vector<1x4xf32>
    %155 = vector.extract_strided_slice %153 {offsets = [0, 4], sizes = [1, 4], strides = [1, 1]} : vector<1x40xf32> to vector<1x4xf32>
    %156 = vector.extract_strided_slice %153 {offsets = [0, 8], sizes = [1, 16], strides = [1, 1]} : vector<1x40xf32> to vector<1x16xf32>
    %157 = vector.extract_strided_slice %153 {offsets = [0, 24], sizes = [1, 16], strides = [1, 1]} : vector<1x40xf32> to vector<1x16xf32>
    %c0_48 = arith.constant 0 : index
    %c0_49 = arith.constant 0 : index
    %158 = vector.load %arg15[%c0_48, %c0_49] : memref<16x4xf32, #tpu.memory_space<vmem>>, vector<16x4xf32>
    %cst_50 = arith.constant dense<0.000000e+00> : vector<12x4xf32>
    %159 = tpu.matmul %152, %158, %cst_50 {dimension_numbers = #tpu.dot_dimension_numbers<[1], [0], [0], [1], [0, 0, 1, 1], [], []>} : vector<12x16xf32>, vector<16x4xf32>, vector<12x4xf32> -> vector<12x4xf32>
    %160 = vector.broadcast %154 : vector<1x4xf32> to vector<12x4xf32>
    %161 = arith.addf %159, %160 : vector<12x4xf32>
    %c0_51 = arith.constant 0 : index
    %c0_52 = arith.constant 0 : index
    %162 = vector.load %arg16[%c0_51, %c0_52] : memref<4x16xf32, #tpu.memory_space<vmem>>, vector<4x16xf32>
    %cst_53 = arith.constant dense<0.000000e+00> : vector<12x16xf32>
    %163 = tpu.matmul %161, %162, %cst_53 {dimension_numbers = #tpu.dot_dimension_numbers<[1], [0], [0], [1], [0, 0, 1, 1], [], []>} : vector<12x4xf32>, vector<4x16xf32>, vector<12x16xf32> -> vector<12x16xf32>
    %164 = vector.broadcast %156 : vector<1x16xf32> to vector<12x16xf32>
    %165 = arith.addf %163, %164 : vector<12x16xf32>
    %cst_54 = arith.constant 0.000000e+00 : f32
    %166 = vector.broadcast %cst_54 : f32 to vector<12x16xf32>
    %167 = arith.maximumf %165, %166 : vector<12x16xf32>
    %168 = vector.extract_strided_slice %167 {offsets = [0, 0], sizes = [12, 4], strides = [1, 1]} : vector<12x16xf32> to vector<12x4xf32>
    %169 = vector.extract_strided_slice %1 {offsets = [0, 0], sizes = [12, 1], strides = [1, 1]} : vector<12x4xf32> to vector<12x1xf32>
    %170 = vector.broadcast %169 : vector<12x1xf32> to vector<12x4xf32>
    %171 = arith.mulf %168, %170 : vector<12x4xf32>
    %172 = vector.extract_strided_slice %167 {offsets = [0, 4], sizes = [12, 4], strides = [1, 1]} : vector<12x16xf32> to vector<12x4xf32>
    %173 = vector.extract_strided_slice %1 {offsets = [0, 1], sizes = [12, 1], strides = [1, 1]} : vector<12x4xf32> to vector<12x1xf32>
    %174 = vector.broadcast %173 : vector<12x1xf32> to vector<12x4xf32>
    %175 = arith.mulf %172, %174 : vector<12x4xf32>
    %176 = arith.addf %171, %175 : vector<12x4xf32>
    %177 = vector.extract_strided_slice %167 {offsets = [0, 8], sizes = [12, 4], strides = [1, 1]} : vector<12x16xf32> to vector<12x4xf32>
    %178 = vector.extract_strided_slice %1 {offsets = [0, 2], sizes = [12, 1], strides = [1, 1]} : vector<12x4xf32> to vector<12x1xf32>
    %179 = vector.broadcast %178 : vector<12x1xf32> to vector<12x4xf32>
    %180 = arith.mulf %177, %179 : vector<12x4xf32>
    %181 = arith.addf %176, %180 : vector<12x4xf32>
    %182 = vector.extract_strided_slice %167 {offsets = [0, 12], sizes = [12, 4], strides = [1, 1]} : vector<12x16xf32> to vector<12x4xf32>
    %183 = vector.extract_strided_slice %1 {offsets = [0, 3], sizes = [12, 1], strides = [1, 1]} : vector<12x4xf32> to vector<12x1xf32>
    %184 = vector.broadcast %183 : vector<12x1xf32> to vector<12x4xf32>
    %185 = arith.mulf %182, %184 : vector<12x4xf32>
    %186 = arith.addf %181, %185 : vector<12x4xf32>
    %cst_55 = arith.constant dense<0.000000e+00> : vector<24x4xf32>
    %187 = tpu.matmul %12, %186, %cst_55 {dimension_numbers = #tpu.dot_dimension_numbers<[1], [0], [0], [1], [0, 0, 1, 1], [], []>} : vector<24x12xf32>, vector<12x4xf32>, vector<24x4xf32> -> vector<24x4xf32>
    %c0_56 = arith.constant 0 : index
    %c0_57 = arith.constant 0 : index
    %188 = vector.load %arg17[%c0_56, %c0_57] : memref<4x16xf32, #tpu.memory_space<vmem>>, vector<4x16xf32>
    %cst_58 = arith.constant dense<0.000000e+00> : vector<24x16xf32>
    %189 = tpu.matmul %187, %188, %cst_58 {dimension_numbers = #tpu.dot_dimension_numbers<[1], [0], [0], [1], [0, 0, 1, 1], [], []>} : vector<24x4xf32>, vector<4x16xf32>, vector<24x16xf32> -> vector<24x16xf32>
    %190 = vector.broadcast %157 : vector<1x16xf32> to vector<24x16xf32>
    %191 = arith.addf %189, %190 : vector<24x16xf32>
    %cst_59 = arith.constant 0.000000e+00 : f32
    %192 = vector.broadcast %cst_59 : f32 to vector<24x16xf32>
    %193 = arith.maximumf %191, %192 : vector<24x16xf32>
    %194 = vector.extract_strided_slice %193 {offsets = [0, 0], sizes = [24, 4], strides = [1, 1]} : vector<24x16xf32> to vector<24x4xf32>
    %195 = vector.extract_strided_slice %2 {offsets = [0, 0], sizes = [24, 1], strides = [1, 1]} : vector<24x4xf32> to vector<24x1xf32>
    %196 = vector.broadcast %195 : vector<24x1xf32> to vector<24x4xf32>
    %197 = arith.mulf %194, %196 : vector<24x4xf32>
    %198 = vector.extract_strided_slice %193 {offsets = [0, 4], sizes = [24, 4], strides = [1, 1]} : vector<24x16xf32> to vector<24x4xf32>
    %199 = vector.extract_strided_slice %2 {offsets = [0, 1], sizes = [24, 1], strides = [1, 1]} : vector<24x4xf32> to vector<24x1xf32>
    %200 = vector.broadcast %199 : vector<24x1xf32> to vector<24x4xf32>
    %201 = arith.mulf %198, %200 : vector<24x4xf32>
    %202 = arith.addf %197, %201 : vector<24x4xf32>
    %203 = vector.extract_strided_slice %193 {offsets = [0, 8], sizes = [24, 4], strides = [1, 1]} : vector<24x16xf32> to vector<24x4xf32>
    %204 = vector.extract_strided_slice %2 {offsets = [0, 2], sizes = [24, 1], strides = [1, 1]} : vector<24x4xf32> to vector<24x1xf32>
    %205 = vector.broadcast %204 : vector<24x1xf32> to vector<24x4xf32>
    %206 = arith.mulf %203, %205 : vector<24x4xf32>
    %207 = arith.addf %202, %206 : vector<24x4xf32>
    %208 = vector.extract_strided_slice %193 {offsets = [0, 12], sizes = [24, 4], strides = [1, 1]} : vector<24x16xf32> to vector<24x4xf32>
    %209 = vector.extract_strided_slice %2 {offsets = [0, 3], sizes = [24, 1], strides = [1, 1]} : vector<24x4xf32> to vector<24x1xf32>
    %210 = vector.broadcast %209 : vector<24x1xf32> to vector<24x4xf32>
    %211 = arith.mulf %208, %210 : vector<24x4xf32>
    %212 = arith.addf %207, %211 : vector<24x4xf32>
    %cst_60 = arith.constant dense<0.000000e+00> : vector<12x4xf32>
    %213 = tpu.matmul %20, %212, %cst_60 {dimension_numbers = #tpu.dot_dimension_numbers<[1], [0], [0], [1], [0, 0, 1, 1], [], []>} : vector<12x24xf32>, vector<24x4xf32>, vector<12x4xf32> -> vector<12x4xf32>
    %214 = arith.addf %161, %213 : vector<12x4xf32>
    %215 = vector.broadcast %155 : vector<1x4xf32> to vector<12x4xf32>
    %216 = arith.addf %214, %215 : vector<12x4xf32>
    %cst_61 = arith.constant 0.000000e+00 : f32
    %217 = vector.broadcast %cst_61 : f32 to vector<12x4xf32>
    %218 = arith.maximumf %216, %217 : vector<12x4xf32>
    %c0_62 = arith.constant 0 : index
    %c0_63 = arith.constant 0 : index
    %219 = vector.load %arg19[%c0_62, %c0_63] : memref<12x4xf32, #tpu.memory_space<vmem>>, vector<12x4xf32>
    tpu.vector_store %arg19[%c0_62, %c0_63], %218 {strides = array<i32>} : memref<12x4xf32, #tpu.memory_space<vmem>>, vector<12x4xf32>,
    return
  }
}

</mosaic_0001>

<bundles_post_ra>
// kernel: our_model_forward.1
= control target key start
LH: loop header
LB: loop body
LE: loop exit
PB: predicated region body
PF: predicated region fallthrough
CT: control target
= control target key end

     0   :  { %vm133_vm0 = vcmask 64512   ;;  %v1137_v3 = vmov 1   ;;  %s1138_s30 = smov 96   ;;  %v1139_v9 = vmov 2   ;;  %v1140_v10 = vmov 0   ;;  %s1144_s23 = smov 120   ;;  %s1637_s7 = inlined_call_operand.vmem [shape: f32[8,16], index: 7, kind: input, shape index: {}]   ;;  %s1638_s0 = inlined_call_operand.vmem [shape: f32[12,8], index: 0, kind: input, shape index: {}]   ;;  %s1639_s8 = inlined_call_operand.vmem [shape: f32[16,16], index: 8, kind: input, shape index: {}]   ;;  %s1640_s5 = inlined_call_operand.vmem [shape: f32[12,4], index: 5, kind: input, shape index: {}]   ;;  %s1641_s10 = inlined_call_operand.vmem [shape: f32[1,112], index: 10, kind: input, shape index: {}]   ;;  %s1642_s3 = inlined_call_operand.vmem [shape: f32[24,1], index: 3, kind: input, shape index: {}]   ;;  %s1643_s1 = inlined_call_operand.vmem [shape: s32[24,1], index: 1, kind: input, shape index: {}]   ;;  %s1644_s6 = inlined_call_operand.vmem [shape: f32[24,4], index: 6, kind: input, shape index: {}]   ;;  %s1645_s9 = inlined_call_operand.vmem [shape: f32[4,64], index: 9, kind: input, shape index: {}]   ;;  %s1646_s2 = inlined_call_operand.vmem [shape: s32[1,24], index: 2, kind: input, shape index: {}]   ;;  %s1647_s4 = inlined_call_operand.vmem [shape: f32[12,1], index: 4, kind: input, shape index: {}]   ;;  %s1648_s14 = inlined_call_operand.vmem [shape: f32[1,112], index: 14, kind: input, shape index: {}]   ;;  %s1649_s11 = inlined_call_operand.vmem [shape: f32[16,16], index: 11, kind: input, shape index: {}]   ;;  %s1650_s12 = inlined_call_operand.vmem [shape: f32[16,16], index: 12, kind: input, shape index: {}]   ;;  %s1651_s13 = inlined_call_operand.vmem [shape: f32[4,64], index: 13, kind: input, shape index: {}]   ;;  %s1652_s18 = inlined_call_operand.vmem [shape: f32[1,40], index: 18, kind: input, shape index: {}]   ;;  %s1653_s15 = inlined_call_operand.vmem [shape: f32[16,4], index: 15, kind: input, shape index: {}]   ;;  %s1654_s16 = inlined_call_operand.vmem [shape: f32[4,16], index: 16, kind: input, shape index: {}]   ;;  %s1655_s17 = inlined_call_operand.vmem [shape: f32[4,16], index: 17, kind: input, shape index: {}]   ;;  %s1656_s19 = inlined_call_operand.vmem [shape: f32[12,4], index: 19, kind: output, shape index: {}]  }
   0x1   :  { %1660 = sst [smem:[#allocation2_spill]] %s1637_s7  ;;  %1114 = vset.pattern.permute.xlu1 %v1137_v3  ;;  %1113 = vset.pattern.permute.xlu0 %v1137_v3  ;;  %v1268_v6 = vld [vmem:[%s1641_s10] ss:$0 sm:$0xff]  ;;  %v1141_v11 = vmov 3   ;;  %vm168_vm1 = vcmask 130048   ;;  %s1142_s10 = smov 124   ;;  %v73_v52 = vlaneseq }
   0x2   :  { %1661 = sst [smem:[#allocation3_spill]] %s1638_s0  ;;  %165 = vrot.lane.b32.xlu0 %v1268_v6, %s1138_s30  ;;  %1116 = vset.pattern.permute.xlu2 %v1139_v9  ;;  %v87_v32 = vld [vmem:[%s1642_s3] sm:$0xff]  ;;  %v71_v36 = vld [vmem:[%s1643_s1 + $0x10] sm:$0xff]  ;;  %v88_v38 = vld [vmem:[%s1642_s3 + $0x8] sm:$0xff]  ;;  %vm282_vm2 = vcmask 1043456   ;;  %vm272_vm3 = vcmask 97280  }
   0x3   :  { %1662 = sst [smem:[#allocation4_spill]] %s1639_s8  ;;  %s1143_s8 = smov 116   ;;  %v69_v34 = vld [vmem:[%s1643_s1] sm:$0xff]  ;;  %v70_v39 = vld [vmem:[%s1643_s1 + $0x8] sm:$0xff]  ;;  %v89_v40 = vld [vmem:[%s1642_s3 + $0x10] sm:$0xff]  ;;  %v74_v56 = vand.u32 127, %v73_v52 }
   0x4   :  { %1663 = sst [smem:[#allocation5_spill]] %s1640_s5  ;;  %v67_v45 = vld [vmem:[%s1644_s6 + $0x8] sm:$0xff]  ;;  %s1145_s3 = smov 80   ;;  %vm316_vm7 = vcmask 31744   ;;  %vm466_vm9 = vcmask 195584   ;;  %vm1052_vm11 = vcmask 27648  }
   0x5   :  { %s1664_s20 = sld [smem:[#allocation2_spill]] }
   0x6   :  { %s1665_s22 = sld [smem:[#allocation3_spill]] }
   0x7   :  { %s1666_s5 = sld [smem:[#allocation4_spill]] }
   0x8   :  { %s1667_s28 = sld [smem:[#allocation5_spill]] }
   0xb   :  { %v129_v0 = vld [vmem:[%s1664_s20] sm:$0xff] }
   0xc   :  { %v62_v1 = vld [vmem:[%s1665_s22] sm:$0xff]  ;;  %v63_v2 = vld [vmem:[%s1665_s22 + $0x8] sm:$0xf]  ;;  %155 = vmatpush.msra.mxu0 %v129_v0  ;;  %1101 = vmatpush.msra.mxu1 %v129_v0 }
   0xd   :  { %v164_v4 = vld [vmem:[%s1666_s5 + $0x8] sm:$0xff]  ;;  %1058 = vmatmul.msk.f32.vlgmr.msra.gmra.mxu0 %vm133_vm0, %v62_v1  ;;  %1059 = vmatmul.msk.f32.vlgmr.msra.gmra.mxu1 %vm133_vm0, %v63_v2  ;;  %v163_v7 = vld [vmem:[%s1666_s5] sm:$0xff] }
   0xe   :  { %v64_v5 = vld [vmem:[%s1667_s28] sm:$0xff]  ;;  %189 = vmatpush.msrb.mxu1 %v164_v4  ;;  %v65_v8 = vld [vmem:[%s1667_s28 + $0x8] sm:$0xf] }
   0xf   :  { %213 = vperm.xlu1 %1114, %v64_v5   ;;  %217 = vperm.xlu0 %1113, %v65_v8  }
  0x10   :  { %190 = vmatpush.msrb.mxu1 %v163_v7  ;;  %233 = vperm.xlu2 %1116, %v64_v5   ;;  %v66_v7 = vld [vmem:[%s1644_s6] sm:$0xff] }
  0x17   :  { %1115 = vset.pattern.permute.xlu1 %v1139_v9  ;;  %1120 = vset.pattern.permute.xlu0 %v1140_v10 }
  0x18   :  { %237 = vperm.xlu1 %1115, %v65_v8   ;;  %202 = vperm.xlu0 %1120, %v64_v5  }
  0x19   :  { %1117 = vset.pattern.permute.xlu2 %v1141_v11 }
  0x1a   :  { %257 = vperm.xlu2 %1117, %v65_v8  }
  0x20   :  { %1118 = vset.pattern.permute.xlu1 %v1141_v11 }
  0x21   :  { %253 = vperm.xlu1 %1118, %v64_v5   ;;  %v312_v5 = vld [vmem:[%s1645_s9] sm:$0xf] }
  0x22   :  { %1119 = vset.pattern.permute.xlu2 %v1140_v10  ;;  %1066 = vmatpush.msk.msra.mxu3 %vm282_vm2, %v312_v5 }
  0x23   :  { %207 = vperm.xlu2 %1119, %v65_v8   ;;  %v68_v8 = vld [vmem:[%s1644_s6 + $0x10] sm:$0xff]  ;;  %s1146_s6 = smov 112  }
  0x29   :  { %1121 = vset.pattern.permute.xlu1 %v1140_v10 }
  0x6a   :  { %v1295_v19 = vpop.permute.xlu2 %233 }
  0x74   :  { %v166_v16 = vpop.permute.xlu0 %165  ;;  %v1303_v27 = vpop.permute.xlu2 %257 }
  0x7d   :  { %v1340_v41 = vpop.permute.xlu2 %207 }
  0x81   :  { %v1297_v21 = vpop.permute.xlu1 %213  ;;  %v1301_v26 = vpop.permute.xlu0 %217 }
  0x8a   :  { %v157_v12 = vpop.f32.mrf.mxu0  ;;  %v160_v14 = vpop.f32.mrf.mxu1 }
  0x8b   :  { %v1286_v13 = vadd.f32 %v1268_v6, %v157_v12  ;;  %v1291_v15 = vadd.f32 %v1268_v6, %v160_v14  ;;  %v1310_v31 = vpop.permute.xlu1 %237  ;;  %v1342_v43 = vpop.permute.xlu0 %202 }
  0x8d   :  { %1060 = vmatmul.msk.f32.vlgmr.msrb.gmra.mxu1 %vm168_vm1, %v1286_v13 }
  0x93   :  { %v1321_v35 = vpop.permute.xlu1 %253 }
  0x95   :  { %1061 = vmatmul.msk.f32.gmra.mxu1 %vm168_vm1, %v1291_v15 }
 0x10a   :  { %v192_v17 = vpop.f32.mrf.mxu1 }
 0x10b   :  { %v193_v18 = vadd.f32 %v192_v17, %v166_v16 }
 0x10d   :  { %v198_v20 = vmax.f32 %v193_v18, 0.0 }
 0x10f   :  { %v220_v22 = vmul.f32 %v1297_v21, %v198_v20  ;;  %v240_v30 = vmul.f32 %v1295_v19, %v198_v20  ;;  %v260_v37 = vmul.f32 %v1321_v35, %v198_v20  ;;  %v210_v53 = vmul.f32 %v1342_v43, %v198_v20 }
 0x111   :  { %224 = vrot.lane.b32.xlu2 %v220_v22, %s1142_s10 }
 0x112   :  { %v195_v23 = vpop.f32.mrf.mxu1 }
 0x113   :  { %v196_v24 = vadd.f32 %v195_v23, %v166_v16 }
 0x115   :  { %v199_v25 = vmax.f32 %v196_v24, 0.0 }
 0x117   :  { %v261_v28 = vmul.f32 %v1303_v27, %v199_v25  ;;  %v221_v29 = vmul.f32 %v1301_v26, %v199_v25  ;;  %v241_v33 = vmul.f32 %v1310_v31, %v199_v25  ;;  %v211_v47 = vmul.f32 %v1340_v41, %v199_v25 }
 0x119   :  { %266 = vrot.lane.b32.xlu0 %v261_v28, %s1143_s8  ;;  %226 = vrot.lane.b32.xlu1 %v221_v29, %s1142_s10 }
 0x11a   :  { %244 = vrot.lane.b32.xlu2 %v240_v30, %s1144_s23 }
 0x121   :  { %92 = vperm.xlu0 %1120, %v87_v32   ;;  %246 = vrot.lane.b32.xlu1 %v241_v33, %s1144_s23 }
 0x122   :  { %76 = vperm.xlu2 %1119, %v69_v34  }
 0x129   :  { %82 = vperm.xlu0 %1120, %v71_v36   ;;  %264 = vrot.lane.b32.xlu1 %v260_v37, %s1143_s8 }
 0x12a   :  { %97 = vperm.xlu2 %1119, %v88_v38  }
 0x131   :  { %79 = vperm.xlu1 %1121, %v70_v39   ;;  %1122 = vset.pattern.permute.xlu0 %v1137_v3 }
 0x132   :  { %1124 = vset.pattern.permute.xlu2 %v1139_v9  ;;  %385 = vperm.xlu0 %1122, %v68_v8  }
 0x133   :  { %313 = vrot.lane.b32.xlu2 %v1268_v6, %s1145_s3 }
 0x139   :  { %102 = vperm.xlu1 %1121, %v89_v40   ;;  %v114_v40 = vld [vmem:[%s1647_s4] sm:$0xff] }
 0x13a   :  { %1125 = vset.pattern.permute.xlu0 %v1141_v11 }
 0x13b   :  { %415 = vperm.xlu2 %1124, %v68_v8   ;;  %445 = vperm.xlu0 %1125, %v68_v8  }
 0x141   :  { %1123 = vset.pattern.permute.xlu1 %v1137_v3 }
 0x142   :  { %381 = vperm.xlu1 %1123, %v67_v45  }
 0x143   :  { %411 = vperm.xlu2 %1124, %v67_v45   ;;  %1130 = vset.pattern.permute.xlu0 %v1140_v10 }
 0x144   :  { %365 = vperm.xlu0 %1130, %v67_v45  }
 0x14a   :  { %377 = vperm.xlu1 %1123, %v66_v7  }
 0x14b   :  { %1127 = vset.pattern.permute.xlu2 %v1141_v11 }
 0x14c   :  { %441 = vperm.xlu2 %1127, %v67_v45  }
 0x152   :  { %1126 = vset.pattern.permute.xlu1 %v1139_v9 }
 0x153   :  { %407 = vperm.xlu1 %1126, %v66_v7  }
 0x154   :  { %1129 = vset.pattern.permute.xlu2 %v1140_v10 }
 0x155   :  { %370 = vperm.xlu2 %1129, %v68_v8  }
 0x15b   :  { %1128 = vset.pattern.permute.xlu1 %v1141_v11 }
 0x15c   :  { %437 = vperm.xlu1 %1128, %v66_v7  }
 0x15d   :  { %360 = vperm.xlu2 %1129, %v66_v7  }
 0x164   :  { %1131 = vset.pattern.permute.xlu1 %v1140_v10 }
 0x16b   :  { %v225_v42 = vpop.permute.xlu2 %224 }
 0x16c   :  { %v230_v55 = vadd.f32 %v225_v42, %v210_v53  ;;  %v115_v53 = vld [vmem:[%s1647_s4 + $0x8] sm:$0xf] }
 0x174   :  { %v245_v46 = vpop.permute.xlu2 %244 }
 0x175   :  { %v250_v57 = vadd.f32 %v245_v46, %v230_v55 }
 0x17c   :  { %v77_v58 = vpop.permute.xlu2 %76 }
 0x17d   :  { %vm84_vm4 = vcmp.eq.s32.totalorder %v74_v56, %v77_v58 }
 0x184   :  { %v98_v0 = vpop.permute.xlu2 %97 }
 0x18b   :  { %v227_v44 = vpop.permute.xlu1 %226  ;;  %v267_v48 = vpop.permute.xlu0 %266 }
 0x18c   :  { %v231_v49 = vadd.f32 %v227_v44, %v211_v47 }
 0x18d   :  { %v314_v17 = vpop.permute.xlu2 %313 }
 0x193   :  { %v247_v50 = vpop.permute.xlu1 %246  ;;  %v93_v59 = vpop.permute.xlu0 %92 }
 0x194   :  { %v251_v51 = vadd.f32 %v247_v50, %v231_v49  ;;  %v1351_v62 = vsel %vm84_vm4, %v93_v59, 0.0 }
 0x195   :  { %v1391_v28 = vpop.permute.xlu2 %415 }
 0x196   :  { %v271_v54 = vadd.f32 %v267_v48, %v251_v51 }
 0x198   :  { %1062 = vmatpush.msk.msra.mxu2 %vm282_vm2, %v271_v54 }
 0x19b   :  { %v265_v60 = vpop.permute.xlu1 %264  ;;  %v83_v2 = vpop.permute.xlu0 %82 }
 0x19c   :  { %v270_v61 = vadd.f32 %v265_v60, %v250_v57  ;;  %vm86_vm6 = vcmp.eq.s32.totalorder %v74_v56, %v83_v2 }
 0x19d   :  { %v1401_v39 = vpop.permute.xlu2 %411 }
 0x19e   :  { %301 = vmatpush.msra.mxu2 %v270_v61 }
 0x19f   :  { %1063 = vmatmul.msk.f32.vlgmr.msra.gmra.mxu2 %vm272_vm3, %v1351_v62 }
 0x1a3   :  { %v80_v63 = vpop.permute.xlu1 %79 }
 0x1a4   :  { %vm85_vm5 = vcmp.eq.s32.totalorder %v74_v56, %v80_v63  ;;  %v1399_v37 = vpop.permute.xlu0 %385 }
 0x1a5   :  { %v1357_v1 = vsel %vm85_vm5, %v98_v0, 0.0 }
 0x1a6   :  { %v1419_v49 = vpop.permute.xlu2 %441 }
 0x1a7   :  { %1064 = vmatmul.msk.f32.gmra.mxu2 %vm272_vm3, %v1357_v1 }
 0x1ab   :  { %v103_v3 = vpop.permute.xlu1 %102 }
 0x1ac   :  { %v1361_v4 = vsel %vm86_vm6, %v103_v3, 0.0 }
 0x1ad   :  { %v1410_v45 = vpop.permute.xlu0 %445 }
 0x1af   :  { %1065 = vmatmul.msk.f32.gmra.mxu2 %vm272_vm3, %v1361_v4 }
 0x1b4   :  { %v1385_v16 = vpop.permute.xlu1 %381 }
 0x1b6   :  { %v1434_v55 = vpop.permute.xlu0 %365 }
 0x1bc   :  { %v1387_v22 = vpop.permute.xlu1 %377 }
 0x1c5   :  { %v1393_v30 = vpop.permute.xlu1 %407 }
 0x1ce   :  { %v1417_v48 = vpop.permute.xlu1 %437 }
 0x222   :  { %v303_v12 = vpop.f32.mrf.mxu2 }
 0x223   :  { %1067 = vmatmul.msk.f32.vlgmr.msra.gmra.mxu3 %vm316_vm7, %v303_v12 }
 0x22a   :  { %v306_v9 = vpop.f32.mrf.mxu2 }
 0x22b   :  { %1068 = vmatmul.msk.f32.gmra.mxu3 %vm316_vm7, %v306_v9  ;;  %v109_v9 = vshrl.u32 %v73_v52, 7 }
 0x232   :  { %v309_v14 = vpop.f32.mrf.mxu2 }
 0x233   :  { %1069 = vmatmul.msk.f32.gmra.mxu3 %vm316_vm7, %v309_v14  ;;  %v1134_v14 = vld [vmem:[%s1646_s2] ss:$0 sm:$0xff] }
 0x234   :  { %vm112_vm8 = vcmp.eq.s32.totalorder %v109_v9, %v1134_v14 }
 0x2a6   :  { %v346_v18 = vpop.f32.mrf.mxu3 }
 0x2a7   :  { %v347_v20 = vadd.f32 %v346_v18, %v314_v17 }
 0x2a9   :  { %v355_v23 = vmax.f32 %v347_v20, 0.0 }
 0x2ab   :  { %v388_v24 = vmul.f32 %v1387_v22, %v355_v23  ;;  %v418_v32 = vmul.f32 %v1393_v30, %v355_v23  ;;  %v448_v51 = vmul.f32 %v1417_v48, %v355_v23 }
 0x2ad   :  { %394 = vrot.lane.b32.xlu0 %v388_v24, %s1146_s6 }
 0x2ae   :  { %v349_v10 = vpop.f32.mrf.mxu3 }
 0x2af   :  { %v350_v25 = vadd.f32 %v349_v10, %v314_v17 }
 0x2b1   :  { %v356_v29 = vmax.f32 %v350_v25, 0.0 }
 0x2b3   :  { %v389_v33 = vmul.f32 %v1385_v16, %v356_v29  ;;  %v419_v42 = vmul.f32 %v1401_v39, %v356_v29  ;;  %v449_v50 = vmul.f32 %v1419_v49, %v356_v29 }
 0x2b5   :  { %424 = vrot.lane.b32.xlu0 %v418_v32, %s1138_s30  ;;  %396 = vrot.lane.b32.xlu1 %v389_v33, %s1146_s6 }
 0x2b6   :  { %v352_v34 = vpop.f32.mrf.mxu3 }
 0x2b7   :  { %v353_v36 = vadd.f32 %v352_v34, %v314_v17  ;;  %v507_v34 = vld [vmem:[%s1649_s11 + $0x8] sm:$0xff] }
 0x2b8   :  { %531 = vmatpush.msra.mxu1 %v507_v34 }
 0x2b9   :  { %v357_v38 = vmax.f32 %v353_v36, 0.0  ;;  %v506_v36 = vld [vmem:[%s1649_s11] sm:$0xff] }
 0x2ba   :  { %532 = vmatpush.msra.mxu1 %v506_v36 }
 0x2bb   :  { %v420_v44 = vmul.f32 %v1391_v28, %v357_v38  ;;  %v390_v46 = vmul.f32 %v1399_v37, %v357_v38  ;;  %v450_v47 = vmul.f32 %v1410_v45, %v357_v38 }
 0x2bd   :  { %118 = vperm.xlu0 %1130, %v114_v40   ;;  %426 = vrot.lane.b32.xlu1 %v419_v42, %s1138_s30  ;;  %v1463_v40 = vld [vmem:[%s1648_s14] ss:$0 sm:$0xff] }
 0x2be   :  { %428 = vrot.lane.b32.xlu2 %v420_v44, %s1138_s30 }
 0x2c5   :  { %398 = vrot.lane.b32.xlu1 %v390_v46, %s1146_s6  ;;  %1132 = vset.pattern.permute.xlu0 %v1141_v11  ;;  %v1430_v11 = vpop.permute.xlu2 %370 }
 0x2c6   :  { %458 = vrot.lane.b32.xlu2 %v450_v47, %s1145_s3  ;;  %v375_v61 = vmul.f32 %v1430_v11, %v357_v38  ;;  %v541_v38 = vld [vmem:[%s1650_s12 + $0x8] sm:$0xff]  ;;  %542 = vrot.lane.b32.xlu0 %v1463_v40, %s1138_s30 }
 0x2c7   :  { %565 = vmatpush.msrb.mxu3 %v541_v38 }
 0x2cd   :  { %456 = vrot.lane.b32.xlu1 %v449_v50, %s1145_s3  ;;  %v1432_v54 = vpop.permute.xlu2 %360 }
 0x2ce   :  { %454 = vrot.lane.b32.xlu2 %v448_v51, %s1145_s3  ;;  %v373_v3 = vmul.f32 %v1432_v54, %v355_v23 }
 0x2d5   :  { %123 = vperm.xlu1 %1131, %v115_v53  }
 0x2d6   :  { %498 = vrot.lane.b32.xlu2 %v1268_v6, %s1146_s6  ;;  %v374_v6 = vmul.f32 %v1434_v55, %v356_v29  ;;  %v110_v29 = vadd.s32 8, %v109_v9 }
 0x2d8   :  { %vm113_vm10 = vcmp.eq.s32.totalorder %v110_v29, %v1134_v14 }
 0x318   :  { %v429_v57 = vpop.permute.xlu2 %428 }
 0x31f   :  { %v395_v58 = vpop.permute.xlu0 %394 }
 0x320   :  { %v459_v60 = vpop.permute.xlu2 %458  ;;  %v403_v7 = vadd.f32 %v395_v58, %v373_v3  ;;  %v540_v58 = vld [vmem:[%s1650_s12] sm:$0xff] }
 0x321   :  { %566 = vmatpush.msrb.mxu3 %v540_v58 }
 0x327   :  { %v397_v56 = vpop.permute.xlu1 %396  ;;  %v425_v63 = vpop.permute.xlu0 %424 }
 0x328   :  { %v404_v8 = vadd.f32 %v397_v56, %v374_v6  ;;  %v433_v17 = vadd.f32 %v425_v63, %v403_v7  ;;  %v455_v10 = vpop.permute.xlu2 %454 }
 0x32a   :  { %v463_v25 = vadd.f32 %v455_v10, %v433_v17 }
 0x32f   :  { %v427_v59 = vpop.permute.xlu1 %426  ;;  %v119_v23 = vpop.permute.xlu0 %118 }
 0x330   :  { %v434_v18 = vadd.f32 %v427_v59, %v404_v8  ;;  %v1443_v32 = vsel %vm112_vm8, %v119_v23, 0.0  ;;  %v499_v44 = vpop.permute.xlu2 %498 }
 0x337   :  { %v399_v0 = vpop.permute.xlu1 %398 }
 0x338   :  { %v405_v2 = vadd.f32 %v399_v0, %v375_v61 }
 0x33a   :  { %v435_v5 = vadd.f32 %v429_v57, %v405_v2 }
 0x33c   :  { %v465_v12 = vadd.f32 %v459_v60, %v435_v5 }
 0x33e   :  { %486 = vmatpush.msrb.mxu0 %v465_v12 }
 0x33f   :  { %v457_v20 = vpop.permute.xlu1 %456 }
 0x340   :  { %v464_v24 = vadd.f32 %v457_v20, %v434_v18 }
 0x342   :  { %487 = vmatpush.msrb.mxu0 %v464_v24 }
 0x344   :  { %488 = vmatpush.msrb.mxu0 %v463_v25 }
 0x345   :  { %1070 = vmatmul.msk.f32.vlgmr.msrb.gmra.mxu0 %vm466_vm9, %v1443_v32 }
 0x347   :  { %v124_v52 = vpop.permute.xlu1 %123 }
 0x348   :  { %v1447_v33 = vsel %vm113_vm10, %v124_v52, 0.0 }
 0x34d   :  { %1071 = vmatmul.msk.f32.gmra.mxu0 %vm466_vm9, %v1447_v33 }
 0x3c2   :  { %v490_v42 = vpop.f32.mrf.mxu0 }
 0x3c3   :  { %v496_v46 = vadd.f32 %v490_v42, %v1286_v13 }
 0x3c5   :  { %v501_v47 = vadd.f32 %v499_v44, %v496_v46 }
 0x3c7   :  { %v503_v50 = vmax.f32 %v501_v47, 0.0  ;;  %v643_v47 = vld [vmem:[%s1651_s13] sm:$0xf] }
 0x3c8   :  { %1080 = vmatpush.msk.msra.mxu0 %vm282_vm2, %v643_v47 }
 0x3c9   :  { %1072 = vmatmul.msk.f32.vlgmr.msra.gmra.mxu1 %vm168_vm1, %v503_v50 }
 0x3ca   :  { %v493_v51 = vpop.f32.mrf.mxu0 }
 0x3cb   :  { %v497_v53 = vadd.f32 %v493_v51, %v1291_v15  ;;  %v543_v15 = vpop.permute.xlu0 %542 }
 0x3cd   :  { %v502_v56 = vadd.f32 %v499_v44, %v497_v53 }
 0x3cf   :  { %v504_v57 = vmax.f32 %v502_v56, 0.0 }
 0x3d1   :  { %1073 = vmatmul.msk.f32.gmra.mxu1 %vm168_vm1, %v504_v57 }
 0x446   :  { %v534_v59 = vpop.f32.mrf.mxu1 }
 0x447   :  { %v1475_v60 = vadd.f32 %v1463_v40, %v534_v59 }
 0x449   :  { %1074 = vmatmul.msk.f32.vlgmr.msrb.gmra.mxu3 %vm168_vm1, %v1475_v60 }
 0x44e   :  { %v537_v13 = vpop.f32.mrf.mxu1 }
 0x44f   :  { %v1480_v61 = vadd.f32 %v1463_v40, %v537_v13 }
 0x451   :  { %1075 = vmatmul.msk.f32.gmra.mxu3 %vm168_vm1, %v1480_v61 }
 0x4cc   :  { %v568_v63 = vpop.f32.mrf.mxu3 }
 0x4cd   :  { %v569_v0 = vadd.f32 %v568_v63, %v543_v15 }
 0x4cf   :  { %v574_v2 = vmax.f32 %v569_v0, 0.0 }
 0x4d1   :  { %v578_v3 = vmul.f32 %v574_v2, %v1297_v21  ;;  %v602_v14 = vmul.f32 %v574_v2, %v1321_v35  ;;  %v590_v17 = vmul.f32 %v574_v2, %v1295_v19  ;;  %v576_v52 = vmul.f32 %v574_v2, %v1342_v43 }
 0x4d3   :  { %582 = vrot.lane.b32.xlu2 %v578_v3, %s1142_s10 }
 0x4d4   :  { %v571_v6 = vpop.f32.mrf.mxu3 }
 0x4d5   :  { %v572_v5 = vadd.f32 %v571_v6, %v543_v15 }
 0x4d7   :  { %v575_v7 = vmax.f32 %v572_v5, 0.0 }
 0x4d9   :  { %v603_v8 = vmul.f32 %v575_v7, %v1303_v27  ;;  %v591_v12 = vmul.f32 %v575_v7, %v1310_v31  ;;  %v579_v9 = vmul.f32 %v575_v7, %v1301_v26  ;;  %v577_v20 = vmul.f32 %v575_v7, %v1340_v41 }
 0x4db   :  { %608 = vrot.lane.b32.xlu2 %v603_v8, %s1143_s8  ;;  %596 = vrot.lane.b32.xlu0 %v591_v12, %s1144_s23 }
 0x4dc   :  { %584 = vrot.lane.b32.xlu1 %v579_v9, %s1142_s10 }
 0x4e3   :  { %606 = vrot.lane.b32.xlu0 %v602_v14, %s1143_s8 }
 0x4e4   :  { %594 = vrot.lane.b32.xlu1 %v590_v17, %s1144_s23 }
 0x4ec   :  { %644 = vrot.lane.b32.xlu1 %v1463_v40, %s1145_s3 }
 0x52d   :  { %v583_v18 = vpop.permute.xlu2 %582 }
 0x52e   :  { %v588_v36 = vadd.f32 %v583_v18, %v576_v52 }
 0x535   :  { %v609_v29 = vpop.permute.xlu2 %608 }
 0x54d   :  { %v597_v24 = vpop.permute.xlu0 %596 }
 0x54e   :  { %v585_v10 = vpop.permute.xlu1 %584 }
 0x54f   :  { %v589_v23 = vadd.f32 %v585_v10, %v577_v20 }
 0x551   :  { %v601_v25 = vadd.f32 %v597_v24, %v589_v23 }
 0x553   :  { %v613_v34 = vadd.f32 %v609_v29, %v601_v25 }
 0x555   :  { %1076 = vmatpush.msk.msrb.mxu2 %vm282_vm2, %v613_v34  ;;  %v607_v44 = vpop.permute.xlu0 %606 }
 0x556   :  { %v595_v38 = vpop.permute.xlu1 %594 }
 0x557   :  { %v600_v42 = vadd.f32 %v595_v38, %v588_v36 }
 0x559   :  { %v612_v46 = vadd.f32 %v607_v44, %v600_v42 }
 0x55b   :  { %632 = vmatpush.msrb.mxu2 %v612_v46 }
 0x55c   :  { %1077 = vmatmul.msk.f32.vlgmr.msrb.gmra.mxu2 %vm272_vm3, %v1351_v62 }
 0x55e   :  { %v645_v56 = vpop.permute.xlu1 %644 }
 0x564   :  { %1078 = vmatmul.msk.f32.gmra.mxu2 %vm272_vm3, %v1357_v1 }
 0x56c   :  { %1079 = vmatmul.msk.f32.gmra.mxu2 %vm272_vm3, %v1361_v4 }
 0x5df   :  { %v634_v50 = vpop.f32.mrf.mxu2 }
 0x5e0   :  { %1081 = vmatmul.msk.f32.vlgmr.msra.gmra.mxu0 %vm316_vm7, %v634_v50 }
 0x5e7   :  { %v637_v51 = vpop.f32.mrf.mxu2 }
 0x5e8   :  { %1082 = vmatmul.msk.f32.gmra.mxu0 %vm316_vm7, %v637_v51 }
 0x5ef   :  { %v640_v53 = vpop.f32.mrf.mxu2 }
 0x5f0   :  { %1083 = vmatmul.msk.f32.gmra.mxu0 %vm316_vm7, %v640_v53 }
 0x65d   :  { %v676_v57 = vpop.f32.mrf.mxu0 }
 0x65e   :  { %v677_v58 = vadd.f32 %v676_v57, %v645_v56 }
 0x660   :  { %v685_v59 = vmax.f32 %v677_v58, 0.0 }
 0x662   :  { %v691_v13 = vmul.f32 %v685_v59, %v1387_v22  ;;  %v709_v17 = vmul.f32 %v685_v59, %v1393_v30  ;;  %v727_v18 = vmul.f32 %v685_v59, %v1417_v48  ;;  %v688_v50 = vmul.f32 %v685_v59, %v1432_v54  ;;  %v778_v59 = vld [vmem:[%s1653_s15] sm:$0xff] }
 0x664   :  { %697 = vrot.lane.b32.xlu2 %v691_v13, %s1146_s6  ;;  %v779_v13 = vld [vmem:[%s1653_s15 + $0x8] sm:$0xff] }
 0x665   :  { %v679_v15 = vpop.f32.mrf.mxu0  ;;  %803 = vmatpush.msra.mxu3 %v779_v13 }
 0x666   :  { %v680_v63 = vadd.f32 %v679_v15, %v645_v56  ;;  %v1550_v15 = vld [vmem:[%s1652_s18] ss:$0 sm:$0xff] }
 0x667   :  { %804 = vmatpush.msra.mxu3 %v778_v59 }
 0x668   :  { %v686_v0 = vmax.f32 %v680_v63, 0.0 }
 0x66a   :  { %v692_v2 = vmul.f32 %v686_v0, %v1385_v16  ;;  %v710_v7 = vmul.f32 %v686_v0, %v1401_v39  ;;  %v728_v9 = vmul.f32 %v686_v0, %v1419_v49  ;;  %v689_v34 = vmul.f32 %v686_v0, %v1434_v55 }
 0x66c   :  { %699 = vrot.lane.b32.xlu0 %v692_v2, %s1146_s6 }
 0x66d   :  { %v682_v3 = vpop.f32.mrf.mxu0 }
 0x66e   :  { %v683_v6 = vadd.f32 %v682_v3, %v645_v56 }
 0x670   :  { %v687_v5 = vmax.f32 %v683_v6, 0.0 }
 0x672   :  { %v711_v8 = vmul.f32 %v687_v5, %v1391_v28  ;;  %v693_v12 = vmul.f32 %v687_v5, %v1399_v37  ;;  %v729_v14 = vmul.f32 %v687_v5, %v1410_v45  ;;  %v690_v29 = vmul.f32 %v687_v5, %v1430_v11 }
 0x674   :  { %717 = vrot.lane.b32.xlu0 %v710_v7, %s1138_s30  ;;  %719 = vrot.lane.b32.xlu1 %v711_v8, %s1138_s30 }
 0x675   :  { %701 = vrot.lane.b32.xlu2 %v693_v12, %s1146_s6 }
 0x67c   :  { %735 = vrot.lane.b32.xlu0 %v728_v9, %s1145_s3  ;;  %737 = vrot.lane.b32.xlu1 %v729_v14, %s1145_s3  ;;  %v812_v9 = vld [vmem:[%s1654_s16] sm:$0xf] }
 0x67d   :  { %715 = vrot.lane.b32.xlu2 %v709_v17, %s1138_s30 }
 0x684   :  { %733 = vrot.lane.b32.xlu1 %v727_v18, %s1145_s3  ;;  %813 = vrot.lane.b32.xlu0 %v1550_v15, %s1144_s23 }
 0x685   :  { %770 = vrot.lane.b32.xlu2 %v1463_v40, %s1146_s6 }
 0x6be   :  { %v698_v24 = vpop.permute.xlu2 %697 }
 0x6bf   :  { %v706_v53 = vadd.f32 %v698_v24, %v688_v50 }
 0x6cf   :  { %v702_v25 = vpop.permute.xlu2 %701 }
 0x6d0   :  { %v708_v52 = vadd.f32 %v702_v25, %v690_v29 }
 0x6d7   :  { %v716_v40 = vpop.permute.xlu2 %715 }
 0x6d8   :  { %v724_v56 = vadd.f32 %v716_v40, %v706_v53 }
 0x6de   :  { %v700_v20 = vpop.permute.xlu0 %699 }
 0x6df   :  { %v707_v36 = vadd.f32 %v700_v20, %v689_v34  ;;  %v771_v0 = vpop.permute.xlu2 %770 }
 0x6e6   :  { %v718_v10 = vpop.permute.xlu0 %717  ;;  %v720_v23 = vpop.permute.xlu1 %719 }
 0x6e7   :  { %v726_v38 = vadd.f32 %v720_v23, %v708_v52  ;;  %v725_v46 = vadd.f32 %v718_v10, %v707_v36 }
 0x6ee   :  { %v736_v42 = vpop.permute.xlu0 %735  ;;  %v738_v44 = vpop.permute.xlu1 %737 }
 0x6ef   :  { %v744_v47 = vadd.f32 %v738_v44, %v726_v38  ;;  %v743_v51 = vadd.f32 %v736_v42, %v725_v46 }
 0x6f1   :  { %758 = vmatpush.msrb.mxu1 %v744_v47 }
 0x6f3   :  { %759 = vmatpush.msrb.mxu1 %v743_v51 }
 0x6f6   :  { %v734_v57 = vpop.permute.xlu1 %733  ;;  %v814_v18 = vpop.permute.xlu0 %813 }
 0x6f7   :  { %v742_v58 = vadd.f32 %v734_v57, %v724_v56 }
 0x6f9   :  { %760 = vmatpush.msrb.mxu1 %v742_v58 }
 0x6fa   :  { %1084 = vmatmul.msk.f32.vlgmr.msrb.gmra.mxu1 %vm466_vm9, %v1443_v32 }
 0x6fb   :  { %1088 = vmatpush.msk.msra.mxu1 %vm282_vm2, %v812_v9 }
 0x702   :  { %1085 = vmatmul.msk.f32.gmra.mxu1 %vm466_vm9, %v1447_v33 }
 0x777   :  { %v762_v63 = vpop.f32.mrf.mxu1 }
 0x778   :  { %v768_v2 = vadd.f32 %v762_v63, %v1475_v60 }
 0x77a   :  { %v773_v3 = vadd.f32 %v771_v0, %v768_v2 }
 0x77c   :  { %v775_v6 = vmax.f32 %v773_v3, 0.0 }
 0x77e   :  { %1086 = vmatmul.msk.f32.vlgmr.msra.gmra.mxu3 %vm168_vm1, %v775_v6 }
 0x77f   :  { %v765_v5 = vpop.f32.mrf.mxu1 }
 0x780   :  { %v769_v7 = vadd.f32 %v765_v5, %v1480_v61 }
 0x782   :  { %v774_v8 = vadd.f32 %v771_v0, %v769_v7 }
 0x784   :  { %v776_v12 = vmax.f32 %v774_v8, 0.0 }
 0x786   :  { %1087 = vmatmul.msk.f32.gmra.mxu3 %vm168_vm1, %v776_v12 }
 0x801   :  { %v806_v14 = vpop.f32.mrf.mxu3 }
 0x802   :  { %v1563_v60 = vadd.f32 %v1550_v15, %v806_v14 }
 0x804   :  { %1089 = vmatmul.msk.f32.vlgmr.msra.gmra.mxu1 %vm316_vm7, %v1563_v60 }
 0x809   :  { %v809_v17 = vpop.f32.mrf.mxu3 }
 0x80a   :  { %v1568_v61 = vadd.f32 %v1550_v15, %v809_v17 }
 0x80c   :  { %1090 = vmatmul.msk.f32.gmra.mxu1 %vm316_vm7, %v1568_v61 }
 0x881   :  { %v842_v20 = vpop.f32.mrf.mxu1 }
 0x882   :  { %v843_v24 = vadd.f32 %v842_v20, %v814_v18 }
 0x884   :  { %v848_v10 = vmax.f32 %v843_v24, 0.0 }
 0x886   :  { %v852_v23 = vmul.f32 %v848_v10, %v1297_v21  ;;  %v876_v42 = vmul.f32 %v848_v10, %v1321_v35  ;;  %v864_v21 = vmul.f32 %v848_v10, %v1295_v19  ;;  %v850_v19 = vmul.f32 %v848_v10, %v1342_v43 }
 0x888   :  { %856 = vrot.lane.b32.xlu2 %v852_v23, %s1142_s10 }
 0x889   :  { %v845_v25 = vpop.f32.mrf.mxu1 }
 0x88a   :  { %v846_v29 = vadd.f32 %v845_v25, %v814_v18 }
 0x88c   :  { %v849_v52 = vmax.f32 %v846_v29, 0.0 }
 0x88e   :  { %v877_v34 = vmul.f32 %v849_v52, %v1303_v27  ;;  %v865_v36 = vmul.f32 %v849_v52, %v1310_v31  ;;  %v853_v38 = vmul.f32 %v849_v52, %v1301_v26  ;;  %v917_v27 = vld [vmem:[%s1655_s17] sm:$0xf]  ;;  %v851_v26 = vmul.f32 %v849_v52, %v1340_v41  ;;  %s1147_s17 = smov 104  }
 0x88f   :  { %1095 = vmatpush.msk.msrb.mxu0 %vm282_vm2, %v917_v27 }
 0x890   :  { %882 = vrot.lane.b32.xlu2 %v877_v34, %s1143_s8  ;;  %870 = vrot.lane.b32.xlu0 %v865_v36, %s1144_s23 }
 0x891   :  { %858 = vrot.lane.b32.xlu1 %v853_v38, %s1142_s10 }
 0x898   :  { %880 = vrot.lane.b32.xlu0 %v876_v42, %s1143_s8 }
 0x899   :  { %868 = vrot.lane.b32.xlu1 %v864_v21, %s1144_s23 }
 0x8a1   :  { %918 = vrot.lane.b32.xlu1 %v1550_v15, %s1147_s17 }
 0x8e2   :  { %v857_v44 = vpop.permute.xlu2 %856 }
 0x8e3   :  { %v862_v40 = vadd.f32 %v857_v44, %v850_v19 }
 0x8ea   :  { %v883_v35 = vpop.permute.xlu2 %882 }
 0x902   :  { %v871_v31 = vpop.permute.xlu0 %870 }
 0x903   :  { %v859_v46 = vpop.permute.xlu1 %858 }
 0x904   :  { %v863_v47 = vadd.f32 %v859_v46, %v851_v26 }
 0x906   :  { %v875_v50 = vadd.f32 %v871_v31, %v863_v47 }
 0x908   :  { %v887_v51 = vadd.f32 %v883_v35, %v875_v50 }
 0x90a   :  { %1091 = vmatpush.msk.msra.mxu2 %vm282_vm2, %v887_v51  ;;  %v881_v57 = vpop.permute.xlu0 %880 }
 0x90b   :  { %v869_v53 = vpop.permute.xlu1 %868 }
 0x90c   :  { %v874_v56 = vadd.f32 %v869_v53, %v862_v40 }
 0x90e   :  { %v886_v58 = vadd.f32 %v881_v57, %v874_v56 }
 0x910   :  { %906 = vmatpush.msra.mxu2 %v886_v58 }
 0x911   :  { %1092 = vmatmul.msk.f32.vlgmr.msra.gmra.mxu2 %vm272_vm3, %v1351_v62 }
 0x913   :  { %v919_v59 = vpop.permute.xlu1 %918 }
 0x919   :  { %1093 = vmatmul.msk.f32.gmra.mxu2 %vm272_vm3, %v1357_v1 }
 0x921   :  { %1094 = vmatmul.msk.f32.gmra.mxu2 %vm272_vm3, %v1361_v4 }
 0x994   :  { %v908_v41 = vpop.f32.mrf.mxu2 }
 0x995   :  { %1096 = vmatmul.msk.f32.vlgmr.msrb.gmra.mxu0 %vm316_vm7, %v908_v41 }
 0x99c   :  { %v911_v43 = vpop.f32.mrf.mxu2 }
 0x99d   :  { %1097 = vmatmul.msk.f32.gmra.mxu0 %vm316_vm7, %v911_v43 }
 0x9a4   :  { %v914_v13 = vpop.f32.mrf.mxu2 }
 0x9a5   :  { %1098 = vmatmul.msk.f32.gmra.mxu0 %vm316_vm7, %v914_v13 }
 0xa12   :  { %v950_v62 = vpop.f32.mrf.mxu0 }
 0xa13   :  { %v951_v63 = vadd.f32 %v950_v62, %v919_v59 }
 0xa15   :  { %v959_v0 = vmax.f32 %v951_v63, 0.0 }
 0xa17   :  { %v965_v1 = vmul.f32 %v959_v0, %v1387_v22  ;;  %v983_v17 = vmul.f32 %v959_v0, %v1393_v30  ;;  %v962_v34 = vmul.f32 %v959_v0, %v1432_v54 }
 0xa19   :  { %971 = vrot.lane.b32.xlu2 %v965_v1, %s1142_s10 }
 0xa1a   :  { %v953_v2 = vpop.f32.mrf.mxu0 }
 0xa1b   :  { %v954_v3 = vadd.f32 %v953_v2, %v919_v59 }
 0xa1d   :  { %v960_v4 = vmax.f32 %v954_v3, 0.0 }
 0xa1f   :  { %v966_v6 = vmul.f32 %v960_v4, %v1385_v16  ;;  %v984_v12 = vmul.f32 %v960_v4, %v1401_v39  ;;  %v1002_v22 = vmul.f32 %v960_v4, %v1419_v49  ;;  %v963_v24 = vmul.f32 %v960_v4, %v1434_v55 }
 0xa21   :  { %973 = vrot.lane.b32.xlu0 %v966_v6, %s1142_s10 }
 0xa22   :  { %v956_v5 = vpop.f32.mrf.mxu0 }
 0xa23   :  { %v957_v7 = vadd.f32 %v956_v5, %v919_v59 }
 0xa25   :  { %v961_v8 = vmax.f32 %v957_v7, 0.0 }
 0xa27   :  { %v985_v9 = vmul.f32 %v961_v8, %v1391_v28  ;;  %v967_v14 = vmul.f32 %v961_v8, %v1399_v37  ;;  %v1003_v16 = vmul.f32 %v961_v8, %v1410_v45  ;;  %v1001_v28 = vmul.f32 %v959_v0, %v1417_v48 }
 0xa28   :  { %v964_v30 = vmul.f32 %v961_v8, %v1430_v11 }
 0xa29   :  { %991 = vrot.lane.b32.xlu0 %v984_v12, %s1144_s23  ;;  %993 = vrot.lane.b32.xlu1 %v985_v9, %s1144_s23 }
 0xa2a   :  { %975 = vrot.lane.b32.xlu2 %v967_v14, %s1142_s10 }
 0xa31   :  { %1009 = vrot.lane.b32.xlu0 %v1002_v22, %s1143_s8  ;;  %1011 = vrot.lane.b32.xlu1 %v1003_v16, %s1143_s8 }
 0xa32   :  { %989 = vrot.lane.b32.xlu2 %v983_v17, %s1144_s23 }
 0xa39   :  { %1007 = vrot.lane.b32.xlu1 %v1001_v28, %s1143_s8 }
 0xa3a   :  { %1044 = vrot.lane.b32.xlu2 %v1550_v15, %s1142_s10 }
 0xa73   :  { %v972_v39 = vpop.permute.xlu2 %971 }
 0xa74   :  { %v980_v38 = vadd.f32 %v972_v39, %v962_v34 }
 0xa84   :  { %v976_v45 = vpop.permute.xlu2 %975 }
 0xa85   :  { %v982_v20 = vadd.f32 %v976_v45, %v964_v30 }
 0xa8c   :  { %v990_v15 = vpop.permute.xlu2 %989 }
 0xa8d   :  { %v998_v42 = vadd.f32 %v990_v15, %v980_v38 }
 0xa93   :  { %v974_v37 = vpop.permute.xlu0 %973 }
 0xa94   :  { %v981_v10 = vadd.f32 %v974_v37, %v963_v24  ;;  %v1045_v55 = vpop.permute.xlu2 %1044 }
 0xa9b   :  { %v992_v49 = vpop.permute.xlu0 %991  ;;  %v994_v18 = vpop.permute.xlu1 %993 }
 0xa9c   :  { %v1000_v23 = vadd.f32 %v994_v18, %v982_v20  ;;  %v999_v48 = vadd.f32 %v992_v49, %v981_v10 }
 0xaa3   :  { %v1010_v25 = vpop.permute.xlu0 %1009  ;;  %v1012_v29 = vpop.permute.xlu1 %1011 }
 0xaa4   :  { %v1018_v52 = vadd.f32 %v1012_v29, %v1000_v23  ;;  %v1017_v36 = vadd.f32 %v1010_v25, %v999_v48 }
 0xaa6   :  { %1032 = vmatpush.msrb.mxu3 %v1018_v52 }
 0xaa8   :  { %1033 = vmatpush.msrb.mxu3 %v1017_v36 }
 0xaab   :  { %v1008_v21 = vpop.permute.xlu1 %1007 }
 0xaac   :  { %v1016_v44 = vadd.f32 %v1008_v21, %v998_v42 }
 0xaae   :  { %1034 = vmatpush.msrb.mxu3 %v1016_v44 }
 0xaaf   :  { %1099 = vmatmul.msk.f32.vlgmr.msrb.gmra.mxu3 %vm466_vm9, %v1443_v32 }
 0xab7   :  { %1100 = vmatmul.msk.f32.gmra.mxu3 %vm466_vm9, %v1447_v33 }
 0xb32   :  { %v1036_v11 = vpop.f32.mrf.mxu3 }
 0xb33   :  { %v1042_v27 = vadd.f32 %v1036_v11, %v1563_v60 }
 0xb35   :  { %v1047_v54 = vadd.f32 %v1045_v55, %v1042_v27 }
 0xb37   :  { %v1049_v26 = vmax.f32 %v1047_v54, 0.0 }
 0xb39   :  { %1051 = vst.msk [vmem:[%s1656_s19] sm:$0xff] %vm316_vm7, %v1049_v26 }
 0xb3a   :  { %v1039_v31 = vpop.f32.mrf.mxu3 }
 0xb3b   :  { %v1043_v46 = vadd.f32 %v1039_v31, %v1568_v61 }
 0xb3d   :  { %v1048_v47 = vadd.f32 %v1045_v55, %v1043_v46 }
 0xb3f   :  { %v1050_v32 = vmax.f32 %v1048_v47, 0.0 }
 0xb41   :  { %1053 = vst.msk [vmem:[%s1656_s19 + $0x8] sm:$0xf] %vm1052_vm11, %v1050_v32 }

</bundles_post_ra>
